<compile_context>
chip_gen: v7x
topology: tpu7x:2x2x1
jax: 0.10.0
libtpu: 0.0.40
codegen_flags: <defaults>
</compile_context>

<pallas_src>
import functools
import math

import jax
import jax.numpy as jnp
from jax.experimental import pallas as pl
from jax.experimental.pallas import tpu as pltpu


_GELU_C = math.sqrt(2.0 / math.pi)   # Python float -> jaxpr literal (no captured const)


def _gelu(x):
    # tanh approximation of GELU (matches BERT/ERNIE "gelu_new" closely)
    return 0.5 * x * (1.0 + jnp.tanh(_GELU_C * (x + 0.044715 * x * x * x)))


def _ln(x, g, b, eps):
    mu = jnp.mean(x, axis=-1, keepdims=True)
    xc = x - mu
    var = jnp.mean(xc * xc, axis=-1, keepdims=True)
    return xc * jax.lax.rsqrt(var + eps) * g + b


# ---------------------------------------------------------------------------
# Kernel 1: plain LayerNorm (embeddings) — no zero-residual, single launch.
# ---------------------------------------------------------------------------
def _layernorm_kernel(x_ref, g_ref, b_ref, o_ref, *, eps):
    o_ref[...] = _ln(x_ref[...], g_ref[...], b_ref[...], eps).astype(o_ref.dtype)


def layernorm(x, gamma, beta, eps=1e-12):
    M, H = x.shape
    return pl.pallas_call(
        functools.partial(_layernorm_kernel, eps=eps),
        out_shape=jax.ShapeDtypeStruct((M, H), jnp.float32),
        grid=(1,),
        in_specs=[
            pl.BlockSpec((M, H), lambda i: (0, 0)),
            pl.BlockSpec((1, H), lambda i: (0, 0)),
            pl.BlockSpec((1, H), lambda i: (0, 0)),
        ],
        out_specs=pl.BlockSpec((M, H), lambda i: (0, 0)),
    )(x, gamma.reshape(1, H), beta.reshape(1, H))


# ---------------------------------------------------------------------------
# Kernel 2: one fused transformer encoder layer.
#   Per grid-step (one batch element, marked "parallel" so v7x megacore can
#   split batches across TensorCores):
#     QKV proj (fused (H,3H) weight) -> per-head attention with additive key
#     mask -> output proj -> +residual -> LN1 -> FFN(gelu) -> +residual -> LN2
# ---------------------------------------------------------------------------
def _layer_kernel(h_ref, bias_ref, wqkv_ref, bqkv_ref, wo_ref, bo_ref,
                  ln1g_ref, ln1b_ref, w1_ref, b1_ref, w2_ref, b2_ref,
                  ln2g_ref, ln2b_ref, o_ref, ctx_ref, *, num_heads, head_dim,
                  scale, eps):
    H = num_heads * head_dim
    x = h_ref[...]                                            # (S, H)

    # fused Q/K/V projection: one MXU pass, lane-dense (3H) output
    qkv = jnp.dot(x, wqkv_ref[...],
                  preferred_element_type=jnp.float32) + bqkv_ref[...]
    kbias = bias_ref[...]                                     # (1, S) additive key mask

    for hh in range(num_heads):                               # static unrolled loop
        lo = hh * head_dim
        hi = lo + head_dim
        q = qkv[:, lo:hi]                                     # (S, dH)
        k = qkv[:, H + lo:H + hi]
        v = qkv[:, 2 * H + lo:2 * H + hi]
        # scores = q @ k^T  (contract last dims; no explicit transpose op)
        s = jax.lax.dot_general(q, k, (((1,), (1,)), ((), ())),
                                preferred_element_type=jnp.float32) * scale
        s = s + kbias                                         # broadcast over queries
        mx = jnp.max(s, axis=-1, keepdims=True)
        p = jnp.exp(s - mx)
        p = p * pl.reciprocal(jnp.sum(p, axis=-1, keepdims=True), approx=True)
        ctx_ref[:, lo:hi] = jnp.dot(p, v, preferred_element_type=jnp.float32)

    ctx = ctx_ref[...]                                        # (S, H)
    attn = jnp.dot(ctx, wo_ref[...],
                   preferred_element_type=jnp.float32) + bo_ref[...]
    h1 = _ln(attn + x, ln1g_ref[...], ln1b_ref[...], eps)
    ff = _gelu(jnp.dot(h1, w1_ref[...],
                       preferred_element_type=jnp.float32) + b1_ref[...])
    ff2 = jnp.dot(ff, w2_ref[...],
                  preferred_element_type=jnp.float32) + b2_ref[...]
    o_ref[...] = _ln(ff2 + h1, ln2g_ref[...], ln2b_ref[...], eps).astype(o_ref.dtype)


def encoder_layer(h, attn_bias, lp, *, batch, seq, num_heads, head_dim,
                  scale, eps=1e-12):
    H = num_heads * head_dim
    I = lp["w1"].shape[1]
    M = batch * seq

    def full(shape):
        return pl.BlockSpec(shape, lambda b: (0, 0))

    # TODO(synk): for production ERNIE shapes (H=768, S=512, large B) these
    # whole-array blocks must become tiled (tm, tn, tk) grids with VMEM f32
    # accumulators, bf16 MXU inputs, and a vmem_limit_bytes budget (64 MiB on
    # v7x); at the toy shapes here, launch-overhead removal via fusion dominates.
    kernel = functools.partial(_layer_kernel, num_heads=num_heads,
                               head_dim=head_dim, scale=scale, eps=eps)
    return pl.pallas_call(
        kernel,
        out_shape=jax.ShapeDtypeStruct((M, H), jnp.float32),
        grid=(batch,),
        in_specs=[
            pl.BlockSpec((seq, H), lambda b: (b, 0)),           # this batch's rows of h
            pl.BlockSpec((None, 1, seq), lambda b: (b, 0, 0)),  # this batch's key bias
            full((H, 3 * H)), full((1, 3 * H)),
            full((H, H)), full((1, H)),
            full((1, H)), full((1, H)),
            full((H, I)), full((1, I)),
            full((I, H)), full((1, H)),
            full((1, H)), full((1, H)),
        ],
        out_specs=pl.BlockSpec((seq, H), lambda b: (b, 0)),
        scratch_shapes=[pltpu.VMEM((seq, H), jnp.float32)],
        compiler_params=pltpu.CompilerParams(
            dimension_semantics=("parallel",)),
    )(h, attn_bias,
      lp["wqkv"], lp["bqkv"].reshape(1, 3 * H),
      lp["wo"], lp["bo"].reshape(1, H),
      lp["ln1_g"].reshape(1, H), lp["ln1_b"].reshape(1, H),
      lp["w1"], lp["b1"].reshape(1, I),
      lp["w2"], lp["b2"].reshape(1, H),
      lp["ln2_g"].reshape(1, H), lp["ln2_b"].reshape(1, H))


# ---------------------------------------------------------------------------
# Kernel 3: fused pooler (tanh(W_p * cls + b_p)) + classifier head.
# ---------------------------------------------------------------------------
def _head_kernel(cls_ref, wp_ref, bp_ref, wc_ref, bc_ref, o_ref):
    pooled = jnp.tanh(jnp.dot(cls_ref[...], wp_ref[...],
                              preferred_element_type=jnp.float32) + bp_ref[...])
    o_ref[...] = (jnp.dot(pooled, wc_ref[...],
                          preferred_element_type=jnp.float32)
                  + bc_ref[...]).astype(o_ref.dtype)


def pooler_classifier(cls, wp, bp, wc, bc):
    B, H = cls.shape
    C = wc.shape[1]
    return pl.pallas_call(
        _head_kernel,
        out_shape=jax.ShapeDtypeStruct((B, C), jnp.float32),
        grid=(1,),
        in_specs=[
            pl.BlockSpec((B, H), lambda i: (0, 0)),
            pl.BlockSpec((H, H), lambda i: (0, 0)),
            pl.BlockSpec((1, H), lambda i: (0, 0)),
            pl.BlockSpec((H, C), lambda i: (0, 0)),
            pl.BlockSpec((1, C), lambda i: (0, 0)),
        ],
        out_specs=pl.BlockSpec((B, C), lambda i: (0, 0)),
    )(cls, wp, bp.reshape(1, H), wc, bc.reshape(1, C))


# ---------------------------------------------------------------------------
# Model: synthetic ERNIE encoder + pooler + classifier head
# ---------------------------------------------------------------------------
class Config:
    vocab_size = 30
    max_position = 32
    type_vocab = 2
    hidden_size = 32
    num_heads = 2
    intermediate_size = 64
    num_layers = 2
    num_classes = 4


def init_params(cfg, key):
    def nrm(k, shape):
        return jax.random.normal(k, shape, dtype=jnp.float32) * 0.02

    keys = iter(jax.random.split(key, 8 + cfg.num_layers * 8))
    H, I = cfg.hidden_size, cfg.intermediate_size
    p = {
        "word_emb": nrm(next(keys), (cfg.vocab_size, H)),
        "pos_emb": nrm(next(keys), (cfg.max_position, H)),
        "tok_emb": nrm(next(keys), (cfg.type_vocab, H)),
        "emb_ln_g": jnp.ones((H,), jnp.float32),
        "emb_ln_b": jnp.zeros((H,), jnp.float32),
        "layers": [],
        "pooler_w": nrm(next(keys), (H, H)),
        "pooler_b": jnp.zeros((H,), jnp.float32),
        "fc_w": nrm(next(keys), (H, cfg.num_classes)),
        "fc_b": jnp.zeros((cfg.num_classes,), jnp.float32),
    }
    for _ in range(cfg.num_layers):
        p["layers"].append({
            # Q/K/V projections stored fused: one (H, 3H) weight, one (3H,) bias
            "wqkv": nrm(next(keys), (H, 3 * H)),
            "bqkv": jnp.zeros((3 * H,), jnp.float32),
            "wo": nrm(next(keys), (H, H)), "bo": jnp.zeros((H,), jnp.float32),
            "ln1_g": jnp.ones((H,), jnp.float32), "ln1_b": jnp.zeros((H,), jnp.float32),
            "w1": nrm(next(keys), (H, I)), "b1": jnp.zeros((I,), jnp.float32),
            "w2": nrm(next(keys), (I, H)), "b2": jnp.zeros((H,), jnp.float32),
            "ln2_g": jnp.ones((H,), jnp.float32), "ln2_b": jnp.zeros((H,), jnp.float32),
        })
    return p


def ernie_classifier_forward(params, context, mask, cfg):
    B, S = context.shape
    H, nH = cfg.hidden_size, cfg.num_heads
    dH = H // nH
    scale = 1.0 / math.sqrt(dH)          # Python float (never a traced scalar)

    # --- embeddings (gather is XLA glue; norm runs in Pallas) ---
    # token_type_ids are all zero in the reference call, so tok_emb[0] is used.
    emb = (params["word_emb"][context]
           + params["pos_emb"][:S][None, :, :]
           + params["tok_emb"][0][None, None, :])
    h = layernorm(emb.reshape(B * S, H), params["emb_ln_g"], params["emb_ln_b"])

    # additive key-mask bias, precomputed once for all layers: 0 keep, -1e4 pad
    attn_bias = ((1.0 - mask.astype(jnp.float32)) * -10000.0).reshape(B, 1, S)

    for lp in params["layers"]:
        h = encoder_layer(h, attn_bias, lp, batch=B, seq=S,
                          num_heads=nH, head_dim=dH, scale=scale)

    # --- pooler + classifier head in one fused kernel ---
    cls = h.reshape(B, S, H)[:, 0, :]
    logits = pooler_classifier(cls, params["pooler_w"], params["pooler_b"],
                               params["fc_w"], params["fc_b"])
    return logits


if __name__ == "__main__":
    cfg = Config()
    key = jax.random.PRNGKey(0)
    kp, kc = jax.random.split(key)

    params = init_params(cfg, kp)

    B, S = 2, 8
    context = jax.random.randint(kc, (B, S), 0, cfg.vocab_size, dtype=jnp.int32)
    mask = jnp.ones((B, S), dtype=jnp.int32).at[1, 6:].set(0)  # pad tail of seq 1
    # PyTorch forward takes x = (context, seq_len, mask); seq_len is unused.
    x = (context, jnp.array([S, 6], jnp.int32), mask)

    fwd = jax.jit(functools.partial(ernie_classifier_forward, cfg=cfg))
    out = fwd(params, x[0], x[2])
    out = jax.block_until_ready(out)
    assert out.shape == (B, cfg.num_classes)
    print("KERNEL_OK")
</pallas_src>

<mosaic_0001>
module attributes {stable_mosaic.version = 11 : i64} {
  func.func @_head_kernel(%arg0: i32, %arg1: memref<2x32xf32, #tpu.memory_space<vmem>>, %arg2: memref<32x32xf32, #tpu.memory_space<vmem>>, %arg3: memref<1x32xf32, #tpu.memory_space<vmem>>, %arg4: memref<32x4xf32, #tpu.memory_space<vmem>>, %arg5: memref<1x4xf32, #tpu.memory_space<vmem>>, %arg6: memref<2x4xf32, #tpu.memory_space<vmem>>) attributes {dimension_semantics = [#tpu.dimension_semantics<arbitrary>], iteration_bounds = array<i64: 1>, scalar_prefetch = 0 : i64, scratch_operands = 0 : i64, tpu.core_type = #tpu.core_type<tc>, window_params = [{pipeline_mode = #tpu.pipeline_mode<synchronous>, transform_indices = @transform_0, window_bounds = array<i64: 2, 32>}, {pipeline_mode = #tpu.pipeline_mode<synchronous>, transform_indices = @transform_1, window_bounds = array<i64: 32, 32>}, {pipeline_mode = #tpu.pipeline_mode<synchronous>, transform_indices = @transform_2, window_bounds = array<i64: 1, 32>}, {pipeline_mode = #tpu.pipeline_mode<synchronous>, transform_indices = @transform_3, window_bounds = array<i64: 32, 4>}, {pipeline_mode = #tpu.pipeline_mode<synchronous>, transform_indices = @transform_4, window_bounds = array<i64: 1, 4>}, {pipeline_mode = #tpu.pipeline_mode<synchronous>, transform_indices = @transform_5, window_bounds = array<i64: 2, 4>}]} {
    %c0 = arith.constant 0 : index
    %c0_0 = arith.constant 0 : index
    %0 = vector.load %arg1[%c0, %c0_0] : memref<2x32xf32, #tpu.memory_space<vmem>>, vector<2x32xf32>
    %c0_1 = arith.constant 0 : index
    %c0_2 = arith.constant 0 : index
    %1 = vector.load %arg2[%c0_1, %c0_2] : memref<32x32xf32, #tpu.memory_space<vmem>>, vector<32x32xf32>
    %cst = arith.constant dense<0.000000e+00> : vector<2x32xf32>
    %2 = tpu.matmul %0, %1, %cst {dimension_numbers = #tpu.dot_dimension_numbers<[1], [0], [0], [1], [0, 0, 1, 1], [], []>} : vector<2x32xf32>, vector<32x32xf32>, vector<2x32xf32> -> vector<2x32xf32>
    %c0_3 = arith.constant 0 : index
    %c0_4 = arith.constant 0 : index
    %3 = vector.load %arg3[%c0_3, %c0_4] : memref<1x32xf32, #tpu.memory_space<vmem>>, vector<1x32xf32>
    %4 = vector.broadcast %3 : vector<1x32xf32> to vector<2x32xf32>
    %5 = arith.addf %2, %4 : vector<2x32xf32>
    %6 = math.tanh %5 : vector<2x32xf32>
    %c0_5 = arith.constant 0 : index
    %c0_6 = arith.constant 0 : index
    %7 = vector.load %arg4[%c0_5, %c0_6] : memref<32x4xf32, #tpu.memory_space<vmem>>, vector<32x4xf32>
    %cst_7 = arith.constant dense<0.000000e+00> : vector<2x4xf32>
    %8 = tpu.matmul %6, %7, %cst_7 {dimension_numbers = #tpu.dot_dimension_numbers<[1], [0], [0], [1], [0, 0, 1, 1], [], []>} : vector<2x32xf32>, vector<32x4xf32>, vector<2x4xf32> -> vector<2x4xf32>
    %c0_8 = arith.constant 0 : index
    %c0_9 = arith.constant 0 : index
    %9 = vector.load %arg5[%c0_8, %c0_9] : memref<1x4xf32, #tpu.memory_space<vmem>>, vector<1x4xf32>
    %10 = vector.broadcast %9 : vector<1x4xf32> to vector<2x4xf32>
    %11 = arith.addf %8, %10 : vector<2x4xf32>
    %c0_10 = arith.constant 0 : index
    %c0_11 = arith.constant 0 : index
    %12 = vector.load %arg6[%c0_10, %c0_11] : memref<2x4xf32, #tpu.memory_space<vmem>>, vector<2x4xf32>
    tpu.vector_store %arg6[%c0_10, %c0_11], %11 {strides = array<i32>} : memref<2x4xf32, #tpu.memory_space<vmem>>, vector<2x4xf32>,
    return
  }
  func.func @transform_0(%arg0: i32) -> (i32, i32) {
    %c0_i32 = arith.constant 0 : i32
    %c0_i32_0 = arith.constant 0 : i32
    %c0_i32_1 = arith.constant 0 : i32
    return %c0_i32, %c0_i32_0 : i32, i32
  }
  func.func @transform_1(%arg0: i32) -> (i32, i32) {
    %c0_i32 = arith.constant 0 : i32
    %c0_i32_0 = arith.constant 0 : i32
    %c0_i32_1 = arith.constant 0 : i32
    return %c0_i32, %c0_i32_0 : i32, i32
  }
  func.func @transform_2(%arg0: i32) -> (i32, i32) {
    %c0_i32 = arith.constant 0 : i32
    %c0_i32_0 = arith.constant 0 : i32
    %c0_i32_1 = arith.constant 0 : i32
    return %c0_i32, %c0_i32_0 : i32, i32
  }
  func.func @transform_3(%arg0: i32) -> (i32, i32) {
    %c0_i32 = arith.constant 0 : i32
    %c0_i32_0 = arith.constant 0 : i32
    %c0_i32_1 = arith.constant 0 : i32
    return %c0_i32, %c0_i32_0 : i32, i32
  }
  func.func @transform_4(%arg0: i32) -> (i32, i32) {
    %c0_i32 = arith.constant 0 : i32
    %c0_i32_0 = arith.constant 0 : i32
    %c0_i32_1 = arith.constant 0 : i32
    return %c0_i32, %c0_i32_0 : i32, i32
  }
  func.func @transform_5(%arg0: i32) -> (i32, i32) {
    %c0_i32 = arith.constant 0 : i32
    %c0_i32_0 = arith.constant 0 : i32
    %c0_i32_1 = arith.constant 0 : i32
    return %c0_i32, %c0_i32_0 : i32, i32
  }
}

module attributes {stable_mosaic.version = 11 : i64} {
  func.func @_layer_kernel(%arg0: i32, %arg1: memref<8x32xf32, #tpu.memory_space<vmem>>, %arg2: memref<1x1x8xf32, #tpu.memory_space<vmem>>, %arg3: memref<32x96xf32, #tpu.memory_space<vmem>>, %arg4: memref<1x96xf32, #tpu.memory_space<vmem>>, %arg5: memref<32x32xf32, #tpu.memory_space<vmem>>, %arg6: memref<1x32xf32, #tpu.memory_space<vmem>>, %arg7: memref<1x32xf32, #tpu.memory_space<vmem>>, %arg8: memref<1x32xf32, #tpu.memory_space<vmem>>, %arg9: memref<32x64xf32, #tpu.memory_space<vmem>>, %arg10: memref<1x64xf32, #tpu.memory_space<vmem>>, %arg11: memref<64x32xf32, #tpu.memory_space<vmem>>, %arg12: memref<1x32xf32, #tpu.memory_space<vmem>>, %arg13: memref<1x32xf32, #tpu.memory_space<vmem>>, %arg14: memref<1x32xf32, #tpu.memory_space<vmem>>, %arg15: memref<8x32xf32, #tpu.memory_space<vmem>>, %arg16: memref<8x32xf32, #tpu.memory_space<vmem>>) attributes {dimension_semantics = [#tpu.dimension_semantics<parallel>], iteration_bounds = array<i64: 2>, scalar_prefetch = 0 : i64, scratch_operands = 1 : i64, tpu.core_type = #tpu.core_type<tc>, window_params = [{transform_indices = @transform_0, window_bounds = array<i64: 8, 32>}, {transform_indices = @transform_1, window_bounds = array<i64: 1, 1, 8>}, {pipeline_mode = #tpu.pipeline_mode<synchronous>, transform_indices = @transform_2, window_bounds = array<i64: 32, 96>}, {pipeline_mode = #tpu.pipeline_mode<synchronous>, transform_indices = @transform_3, window_bounds = array<i64: 1, 96>}, {pipeline_mode = #tpu.pipeline_mode<synchronous>, transform_indices = @transform_4, window_bounds = array<i64: 32, 32>}, {pipeline_mode = #tpu.pipeline_mode<synchronous>, transform_indices = @transform_5, window_bounds = array<i64: 1, 32>}, {pipeline_mode = #tpu.pipeline_mode<synchronous>, transform_indices = @transform_6, window_bounds = array<i64: 1, 32>}, {pipeline_mode = #tpu.pipeline_mode<synchronous>, transform_indices = @transform_7, window_bounds = array<i64: 1, 32>}, {pipeline_mode = #tpu.pipeline_mode<synchronous>, transform_indices = @transform_8, window_bounds = array<i64: 32, 64>}, {pipeline_mode = #tpu.pipeline_mode<synchronous>, transform_indices = @transform_9, window_bounds = array<i64: 1, 64>}, {pipeline_mode = #tpu.pipeline_mode<synchronous>, transform_indices = @transform_10, window_bounds = array<i64: 64, 32>}, {pipeline_mode = #tpu.pipeline_mode<synchronous>, transform_indices = @transform_11, window_bounds = array<i64: 1, 32>}, {pipeline_mode = #tpu.pipeline_mode<synchronous>, transform_indices = @transform_12, window_bounds = array<i64: 1, 32>}, {pipeline_mode = #tpu.pipeline_mode<synchronous>, transform_indices = @transform_13, window_bounds = array<i64: 1, 32>}, {transform_indices = @transform_14, window_bounds = array<i64: 8, 32>}]} {
    %c0 = arith.constant 0 : index
    %c0_0 = arith.constant 0 : index
    %0 = vector.load %arg1[%c0, %c0_0] : memref<8x32xf32, #tpu.memory_space<vmem>>, vector<8x32xf32>
    %c0_1 = arith.constant 0 : index
    %c0_2 = arith.constant 0 : index
    %1 = vector.load %arg3[%c0_1, %c0_2] : memref<32x96xf32, #tpu.memory_space<vmem>>, vector<32x96xf32>
    %cst = arith.constant dense<0.000000e+00> : vector<8x96xf32>
    %2 = tpu.matmul %0, %1, %cst {dimension_numbers = #tpu.dot_dimension_numbers<[1], [0], [0], [1], [0, 0, 1, 1], [], []>} : vector<8x32xf32>, vector<32x96xf32>, vector<8x96xf32> -> vector<8x96xf32>
    %c0_3 = arith.constant 0 : index
    %c0_4 = arith.constant 0 : index
    %3 = vector.load %arg4[%c0_3, %c0_4] : memref<1x96xf32, #tpu.memory_space<vmem>>, vector<1x96xf32>
    %4 = vector.broadcast %3 : vector<1x96xf32> to vector<8x96xf32>
    %5 = arith.addf %2, %4 : vector<8x96xf32>
    %c0_5 = arith.constant 0 : index
    %c0_6 = arith.constant 0 : index
    %c0_7 = arith.constant 0 : index
    %6 = vector.load %arg2[%c0_5, %c0_6, %c0_7] : memref<1x1x8xf32, #tpu.memory_space<vmem>>, vector<1x1x8xf32>
    %7 = vector.shape_cast %6 : vector<1x1x8xf32> to vector<1x8xf32>
    %8 = vector.extract_strided_slice %5 {offsets = [0, 0], sizes = [8, 16], strides = [1, 1]} : vector<8x96xf32> to vector<8x16xf32>
    %9 = vector.extract_strided_slice %5 {offsets = [0, 32], sizes = [8, 16], strides = [1, 1]} : vector<8x96xf32> to vector<8x16xf32>
    %10 = vector.extract_strided_slice %5 {offsets = [0, 64], sizes = [8, 16], strides = [1, 1]} : vector<8x96xf32> to vector<8x16xf32>
    %cst_8 = arith.constant dense<0.000000e+00> : vector<8x8xf32>
    %11 = tpu.matmul %8, %9, %cst_8 {dimension_numbers = #tpu.dot_dimension_numbers<[1], [1], [0], [0], [0, 0, 1, 0], [], []>} : vector<8x16xf32>, vector<8x16xf32>, vector<8x8xf32> -> vector<8x8xf32>
    %cst_9 = arith.constant 2.500000e-01 : f32
    %12 = vector.broadcast %cst_9 : f32 to vector<8x8xf32>
    %13 = arith.mulf %11, %12 : vector<8x8xf32>
    %14 = vector.broadcast %7 : vector<1x8xf32> to vector<8x8xf32>
    %15 = arith.addf %13, %14 : vector<8x8xf32>
    %cst_10 = arith.constant dense<0xFF800000> : vector<8xf32>
    %16 = vector.multi_reduction <maximumf>, %15, %cst_10 [1] : vector<8x8xf32> to vector<8xf32>
    %17 = vector.shape_cast %16 : vector<8xf32> to vector<8x1xf32>
    %18 = vector.broadcast %17 : vector<8x1xf32> to vector<8x8xf32>
    %19 = arith.subf %15, %18 : vector<8x8xf32>
    %20 = math.exp %19 : vector<8x8xf32>
    %cst_11 = arith.constant dense<0.000000e+00> : vector<8xf32>
    %21 = vector.multi_reduction <add>, %20, %cst_11 [1] : vector<8x8xf32> to vector<8xf32>
    %22 = vector.shape_cast %21 : vector<8xf32> to vector<8x1xf32>
    %23 = tpu.reciprocal %22 {approx = true} : vector<8x1xf32> -> vector<8x1xf32>
    %24 = vector.broadcast %23 : vector<8x1xf32> to vector<8x8xf32>
    %25 = arith.mulf %20, %24 : vector<8x8xf32>
    %cst_12 = arith.constant dense<0.000000e+00> : vector<8x16xf32>
    %26 = tpu.matmul %25, %10, %cst_12 {dimension_numbers = #tpu.dot_dimension_numbers<[1], [0], [0], [1], [0, 0, 1, 1], [], []>} : vector<8x8xf32>, vector<8x16xf32>, vector<8x16xf32> -> vector<8x16xf32>
    %c0_13 = arith.constant 0 : index
    %c0_14 = arith.constant 0 : index
    %27 = vector.load %arg16[%c0_13, %c0_14] : memref<8x32xf32, #tpu.memory_space<vmem>>, vector<8x16xf32>
    tpu.vector_store %arg16[%c0_13, %c0_14], %26 {strides = array<i32>} : memref<8x32xf32, #tpu.memory_space<vmem>>, vector<8x16xf32>,
    %28 = vector.extract_strided_slice %5 {offsets = [0, 16], sizes = [8, 16], strides = [1, 1]} : vector<8x96xf32> to vector<8x16xf32>
    %29 = vector.extract_strided_slice %5 {offsets = [0, 48], sizes = [8, 16], strides = [1, 1]} : vector<8x96xf32> to vector<8x16xf32>
    %30 = vector.extract_strided_slice %5 {offsets = [0, 80], sizes = [8, 16], strides = [1, 1]} : vector<8x96xf32> to vector<8x16xf32>
    %cst_15 = arith.constant dense<0.000000e+00> : vector<8x8xf32>
    %31 = tpu.matmul %28, %29, %cst_15 {dimension_numbers = #tpu.dot_dimension_numbers<[1], [1], [0], [0], [0, 0, 1, 0], [], []>} : vector<8x16xf32>, vector<8x16xf32>, vector<8x8xf32> -> vector<8x8xf32>
    %cst_16 = arith.constant 2.500000e-01 : f32
    %32 = vector.broadcast %cst_16 : f32 to vector<8x8xf32>
    %33 = arith.mulf %31, %32 : vector<8x8xf32>
    %34 = vector.broadcast %7 : vector<1x8xf32> to vector<8x8xf32>
    %35 = arith.addf %33, %34 : vector<8x8xf32>
    %cst_17 = arith.constant dense<0xFF800000> : vector<8xf32>
    %36 = vector.multi_reduction <maximumf>, %35, %cst_17 [1] : vector<8x8xf32> to vector<8xf32>
    %37 = vector.shape_cast %36 : vector<8xf32> to vector<8x1xf32>
    %38 = vector.broadcast %37 : vector<8x1xf32> to vector<8x8xf32>
    %39 = arith.subf %35, %38 : vector<8x8xf32>
    %40 = math.exp %39 : vector<8x8xf32>
    %cst_18 = arith.constant dense<0.000000e+00> : vector<8xf32>
    %41 = vector.multi_reduction <add>, %40, %cst_18 [1] : vector<8x8xf32> to vector<8xf32>
    %42 = vector.shape_cast %41 : vector<8xf32> to vector<8x1xf32>
    %43 = tpu.reciprocal %42 {approx = true} : vector<8x1xf32> -> vector<8x1xf32>
    %44 = vector.broadcast %43 : vector<8x1xf32> to vector<8x8xf32>
    %45 = arith.mulf %40, %44 : vector<8x8xf32>
    %cst_19 = arith.constant dense<0.000000e+00> : vector<8x16xf32>
    %46 = tpu.matmul %45, %30, %cst_19 {dimension_numbers = #tpu.dot_dimension_numbers<[1], [0], [0], [1], [0, 0, 1, 1], [], []>} : vector<8x8xf32>, vector<8x16xf32>, vector<8x16xf32> -> vector<8x16xf32>
    %c0_20 = arith.constant 0 : index
    %c16 = arith.constant 16 : index
    %47 = vector.load %arg16[%c0_20, %c16] : memref<8x32xf32, #tpu.memory_space<vmem>>, vector<8x16xf32>
    tpu.vector_store %arg16[%c0_20, %c16], %46 {strides = array<i32>} : memref<8x32xf32, #tpu.memory_space<vmem>>, vector<8x16xf32>,
    %c0_21 = arith.constant 0 : index
    %c0_22 = arith.constant 0 : index
    %48 = vector.load %arg16[%c0_21, %c0_22] : memref<8x32xf32, #tpu.memory_space<vmem>>, vector<8x32xf32>
    %c0_23 = arith.constant 0 : index
    %c0_24 = arith.constant 0 : index
    %49 = vector.load %arg5[%c0_23, %c0_24] : memref<32x32xf32, #tpu.memory_space<vmem>>, vector<32x32xf32>
    %cst_25 = arith.constant dense<0.000000e+00> : vector<8x32xf32>
    %50 = tpu.matmul %48, %49, %cst_25 {dimension_numbers = #tpu.dot_dimension_numbers<[1], [0], [0], [1], [0, 0, 1, 1], [], []>} : vector<8x32xf32>, vector<32x32xf32>, vector<8x32xf32> -> vector<8x32xf32>
    %c0_26 = arith.constant 0 : index
    %c0_27 = arith.constant 0 : index
    %51 = vector.load %arg6[%c0_26, %c0_27] : memref<1x32xf32, #tpu.memory_space<vmem>>, vector<1x32xf32>
    %52 = vector.broadcast %51 : vector<1x32xf32> to vector<8x32xf32>
    %53 = arith.addf %50, %52 : vector<8x32xf32>
    %54 = arith.addf %53, %0 : vector<8x32xf32>
    %c0_28 = arith.constant 0 : index
    %c0_29 = arith.constant 0 : index
    %55 = vector.load %arg7[%c0_28, %c0_29] : memref<1x32xf32, #tpu.memory_space<vmem>>, vector<1x32xf32>
    %c0_30 = arith.constant 0 : index
    %c0_31 = arith.constant 0 : index
    %56 = vector.load %arg8[%c0_30, %c0_31] : memref<1x32xf32, #tpu.memory_space<vmem>>, vector<1x32xf32>
    %cst_32 = arith.constant dense<0.000000e+00> : vector<8xf32>
    %57 = vector.multi_reduction <add>, %54, %cst_32 [1] : vector<8x32xf32> to vector<8xf32>
    %58 = vector.shape_cast %57 : vector<8xf32> to vector<8x1xf32>
    %cst_33 = arith.constant 3.200000e+01 : f32
    %59 = vector.broadcast %cst_33 : f32 to vector<8x1xf32>
    %60 = arith.divf %58, %59 : vector<8x1xf32>
    %61 = vector.broadcast %60 : vector<8x1xf32> to vector<8x32xf32>
    %62 = arith.subf %54, %61 : vector<8x32xf32>
    %63 = arith.mulf %62, %62 : vector<8x32xf32>
    %cst_34 = arith.constant dense<0.000000e+00> : vector<8xf32>
    %64 = vector.multi_reduction <add>, %63, %cst_34 [1] : vector<8x32xf32> to vector<8xf32>
    %65 = vector.shape_cast %64 : vector<8xf32> to vector<8x1xf32>
    %cst_35 = arith.constant 3.200000e+01 : f32
    %66 = vector.broadcast %cst_35 : f32 to vector<8x1xf32>
    %67 = arith.divf %65, %66 : vector<8x1xf32>
    %cst_36 = arith.constant 9.99999996E-13 : f32
    %68 = vector.broadcast %cst_36 : f32 to vector<8x1xf32>
    %69 = arith.addf %67, %68 : vector<8x1xf32>
    %70 = math.rsqrt %69 : vector<8x1xf32>
    %71 = vector.broadcast %70 : vector<8x1xf32> to vector<8x32xf32>
    %72 = arith.mulf %62, %71 : vector<8x32xf32>
    %73 = vector.broadcast %55 : vector<1x32xf32> to vector<8x32xf32>
    %74 = arith.mulf %72, %73 : vector<8x32xf32>
    %75 = vector.broadcast %56 : vector<1x32xf32> to vector<8x32xf32>
    %76 = arith.addf %74, %75 : vector<8x32xf32>
    %c0_37 = arith.constant 0 : index
    %c0_38 = arith.constant 0 : index
    %77 = vector.load %arg9[%c0_37, %c0_38] : memref<32x64xf32, #tpu.memory_space<vmem>>, vector<32x64xf32>
    %cst_39 = arith.constant dense<0.000000e+00> : vector<8x64xf32>
    %78 = tpu.matmul %76, %77, %cst_39 {dimension_numbers = #tpu.dot_dimension_numbers<[1], [0], [0], [1], [0, 0, 1, 1], [], []>} : vector<8x32xf32>, vector<32x64xf32>, vector<8x64xf32> -> vector<8x64xf32>
    %c0_40 = arith.constant 0 : index
    %c0_41 = arith.constant 0 : index
    %79 = vector.load %arg10[%c0_40, %c0_41] : memref<1x64xf32, #tpu.memory_space<vmem>>, vector<1x64xf32>
    %80 = vector.broadcast %79 : vector<1x64xf32> to vector<8x64xf32>
    %81 = arith.addf %78, %80 : vector<8x64xf32>
    %cst_42 = arith.constant 5.000000e-01 : f32
    %82 = vector.broadcast %cst_42 : f32 to vector<8x64xf32>
    %83 = arith.mulf %82, %81 : vector<8x64xf32>
    %cst_43 = arith.constant 4.471500e-02 : f32
    %84 = vector.broadcast %cst_43 : f32 to vector<8x64xf32>
    %85 = arith.mulf %84, %81 : vector<8x64xf32>
    %86 = arith.mulf %85, %81 : vector<8x64xf32>
    %87 = arith.mulf %86, %81 : vector<8x64xf32>
    %88 = arith.addf %81, %87 : vector<8x64xf32>
    %cst_44 = arith.constant 0.797884583 : f32
    %89 = vector.broadcast %cst_44 : f32 to vector<8x64xf32>
    %90 = arith.mulf %89, %88 : vector<8x64xf32>
    %91 = math.tanh %90 : vector<8x64xf32>
    %cst_45 = arith.constant 1.000000e+00 : f32
    %92 = vector.broadcast %cst_45 : f32 to vector<8x64xf32>
    %93 = arith.addf %92, %91 : vector<8x64xf32>
    %94 = arith.mulf %83, %93 : vector<8x64xf32>
    %c0_46 = arith.constant 0 : index
    %c0_47 = arith.constant 0 : index
    %95 = vector.load %arg11[%c0_46, %c0_47] : memref<64x32xf32, #tpu.memory_space<vmem>>, vector<64x32xf32>
    %cst_48 = arith.constant dense<0.000000e+00> : vector<8x32xf32>
    %96 = tpu.matmul %94, %95, %cst_48 {dimension_numbers = #tpu.dot_dimension_numbers<[1], [0], [0], [1], [0, 0, 1, 1], [], []>} : vector<8x64xf32>, vector<64x32xf32>, vector<8x32xf32> -> vector<8x32xf32>
    %c0_49 = arith.constant 0 : index
    %c0_50 = arith.constant 0 : index
    %97 = vector.load %arg12[%c0_49, %c0_50] : memref<1x32xf32, #tpu.memory_space<vmem>>, vector<1x32xf32>
    %98 = vector.broadcast %97 : vector<1x32xf32> to vector<8x32xf32>
    %99 = arith.addf %96, %98 : vector<8x32xf32>
    %100 = arith.addf %99, %76 : vector<8x32xf32>
    %c0_51 = arith.constant 0 : index
    %c0_52 = arith.constant 0 : index
    %101 = vector.load %arg13[%c0_51, %c0_52] : memref<1x32xf32, #tpu.memory_space<vmem>>, vector<1x32xf32>
    %c0_53 = arith.constant 0 : index
    %c0_54 = arith.constant 0 : index
    %102 = vector.load %arg14[%c0_53, %c0_54] : memref<1x32xf32, #tpu.memory_space<vmem>>, vector<1x32xf32>
    %cst_55 = arith.constant dense<0.000000e+00> : vector<8xf32>
    %103 = vector.multi_reduction <add>, %100, %cst_55 [1] : vector<8x32xf32> to vector<8xf32>
    %104 = vector.shape_cast %103 : vector<8xf32> to vector<8x1xf32>
    %cst_56 = arith.constant 3.200000e+01 : f32
    %105 = vector.broadcast %cst_56 : f32 to vector<8x1xf32>
    %106 = arith.divf %104, %105 : vector<8x1xf32>
    %107 = vector.broadcast %106 : vector<8x1xf32> to vector<8x32xf32>
    %108 = arith.subf %100, %107 : vector<8x32xf32>
    %109 = arith.mulf %108, %108 : vector<8x32xf32>
    %cst_57 = arith.constant dense<0.000000e+00> : vector<8xf32>
    %110 = vector.multi_reduction <add>, %109, %cst_57 [1] : vector<8x32xf32> to vector<8xf32>
    %111 = vector.shape_cast %110 : vector<8xf32> to vector<8x1xf32>
    %cst_58 = arith.constant 3.200000e+01 : f32
    %112 = vector.broadcast %cst_58 : f32 to vector<8x1xf32>
    %113 = arith.divf %111, %112 : vector<8x1xf32>
    %cst_59 = arith.constant 9.99999996E-13 : f32
    %114 = vector.broadcast %cst_59 : f32 to vector<8x1xf32>
    %115 = arith.addf %113, %114 : vector<8x1xf32>
    %116 = math.rsqrt %115 : vector<8x1xf32>
    %117 = vector.broadcast %116 : vector<8x1xf32> to vector<8x32xf32>
    %118 = arith.mulf %108, %117 : vector<8x32xf32>
    %119 = vector.broadcast %101 : vector<1x32xf32> to vector<8x32xf32>
    %120 = arith.mulf %118, %119 : vector<8x32xf32>
    %121 = vector.broadcast %102 : vector<1x32xf32> to vector<8x32xf32>
    %122 = arith.addf %120, %121 : vector<8x32xf32>
    %c0_60 = arith.constant 0 : index
    %c0_61 = arith.constant 0 : index
    %123 = vector.load %arg15[%c0_60, %c0_61] : memref<8x32xf32, #tpu.memory_space<vmem>>, vector<8x32xf32>
    tpu.vector_store %arg15[%c0_60, %c0_61], %122 {strides = array<i32>} : memref<8x32xf32, #tpu.memory_space<vmem>>, vector<8x32xf32>,
    return
  }
  func.func @transform_0(%arg0: i32) -> (i32, i32) {
    %c0_i32 = arith.constant 0 : i32
    %c0_i32_0 = arith.constant 0 : i32
    return %arg0, %c0_i32 : i32, i32
  }
  func.func @transform_1(%arg0: i32) -> (i32, i32, i32) {
    %c0_i32 = arith.constant 0 : i32
    %c0_i32_0 = arith.constant 0 : i32
    %c0_i32_1 = arith.constant 0 : i32
    return %arg0, %c0_i32, %c0_i32_0 : i32, i32, i32
  }
  func.func @transform_2(%arg0: i32) -> (i32, i32) {
    %c0_i32 = arith.constant 0 : i32
    %c0_i32_0 = arith.constant 0 : i32
    %c0_i32_1 = arith.constant 0 : i32
    return %c0_i32, %c0_i32_0 : i32, i32
  }
  func.func @transform_3(%arg0: i32) -> (i32, i32) {
    %c0_i32 = arith.constant 0 : i32
    %c0_i32_0 = arith.constant 0 : i32
    %c0_i32_1 = arith.constant 0 : i32
    return %c0_i32, %c0_i32_0 : i32, i32
  }
  func.func @transform_4(%arg0: i32) -> (i32, i32) {
    %c0_i32 = arith.constant 0 : i32
    %c0_i32_0 = arith.constant 0 : i32
    %c0_i32_1 = arith.constant 0 : i32
    return %c0_i32, %c0_i32_0 : i32, i32
  }
  func.func @transform_5(%arg0: i32) -> (i32, i32) {
    %c0_i32 = arith.constant 0 : i32
    %c0_i32_0 = arith.constant 0 : i32
    %c0_i32_1 = arith.constant 0 : i32
    return %c0_i32, %c0_i32_0 : i32, i32
  }
  func.func @transform_6(%arg0: i32) -> (i32, i32) {
    %c0_i32 = arith.constant 0 : i32
    %c0_i32_0 = arith.constant 0 : i32
    %c0_i32_1 = arith.constant 0 : i32
    return %c0_i32, %c0_i32_0 : i32, i32
  }
  func.func @transform_7(%arg0: i32) -> (i32, i32) {
    %c0_i32 = arith.constant 0 : i32
    %c0_i32_0 = arith.constant 0 : i32
    %c0_i32_1 = arith.constant 0 : i32
    return %c0_i32, %c0_i32_0 : i32, i32
  }
  func.func @transform_8(%arg0: i32) -> (i32, i32) {
    %c0_i32 = arith.constant 0 : i32
    %c0_i32_0 = arith.constant 0 : i32
    %c0_i32_1 = arith.constant 0 : i32
    return %c0_i32, %c0_i32_0 : i32, i32
  }
  func.func @transform_9(%arg0: i32) -> (i32, i32) {
    %c0_i32 = arith.constant 0 : i32
    %c0_i32_0 = arith.constant 0 : i32
    %c0_i32_1 = arith.constant 0 : i32
    return %c0_i32, %c0_i32_0 : i32, i32
  }
  func.func @transform_10(%arg0: i32) -> (i32, i32) {
    %c0_i32 = arith.constant 0 : i32
    %c0_i32_0 = arith.constant 0 : i32
    %c0_i32_1 = arith.constant 0 : i32
    return %c0_i32, %c0_i32_0 : i32, i32
  }
  func.func @transform_11(%arg0: i32) -> (i32, i32) {
    %c0_i32 = arith.constant 0 : i32
    %c0_i32_0 = arith.constant 0 : i32
    %c0_i32_1 = arith.constant 0 : i32
    return %c0_i32, %c0_i32_0 : i32, i32
  }
  func.func @transform_12(%arg0: i32) -> (i32, i32) {
    %c0_i32 = arith.constant 0 : i32
    %c0_i32_0 = arith.constant 0 : i32
    %c0_i32_1 = arith.constant 0 : i32
    return %c0_i32, %c0_i32_0 : i32, i32
  }
  func.func @transform_13(%arg0: i32) -> (i32, i32) {
    %c0_i32 = arith.constant 0 : i32
    %c0_i32_0 = arith.constant 0 : i32
    %c0_i32_1 = arith.constant 0 : i32
    return %c0_i32, %c0_i32_0 : i32, i32
  }
  func.func @transform_14(%arg0: i32) -> (i32, i32) {
    %c0_i32 = arith.constant 0 : i32
    %c0_i32_0 = arith.constant 0 : i32
    return %arg0, %c0_i32 : i32, i32
  }
}

module attributes {stable_mosaic.version = 11 : i64} {
  func.func @_layernorm_kernel(%arg0: i32, %arg1: memref<16x32xf32, #tpu.memory_space<vmem>>, %arg2: memref<1x32xf32, #tpu.memory_space<vmem>>, %arg3: memref<1x32xf32, #tpu.memory_space<vmem>>, %arg4: memref<16x32xf32, #tpu.memory_space<vmem>>) attributes {dimension_semantics = [#tpu.dimension_semantics<arbitrary>], iteration_bounds = array<i64: 1>, scalar_prefetch = 0 : i64, scratch_operands = 0 : i64, tpu.core_type = #tpu.core_type<tc>, window_params = [{pipeline_mode = #tpu.pipeline_mode<synchronous>, transform_indices = @transform_0, window_bounds = array<i64: 16, 32>}, {pipeline_mode = #tpu.pipeline_mode<synchronous>, transform_indices = @transform_1, window_bounds = array<i64: 1, 32>}, {pipeline_mode = #tpu.pipeline_mode<synchronous>, transform_indices = @transform_2, window_bounds = array<i64: 1, 32>}, {pipeline_mode = #tpu.pipeline_mode<synchronous>, transform_indices = @transform_3, window_bounds = array<i64: 16, 32>}]} {
    %c0 = arith.constant 0 : index
    %c0_0 = arith.constant 0 : index
    %0 = vector.load %arg1[%c0, %c0_0] : memref<16x32xf32, #tpu.memory_space<vmem>>, vector<16x32xf32>
    %c0_1 = arith.constant 0 : index
    %c0_2 = arith.constant 0 : index
    %1 = vector.load %arg2[%c0_1, %c0_2] : memref<1x32xf32, #tpu.memory_space<vmem>>, vector<1x32xf32>
    %c0_3 = arith.constant 0 : index
    %c0_4 = arith.constant 0 : index
    %2 = vector.load %arg3[%c0_3, %c0_4] : memref<1x32xf32, #tpu.memory_space<vmem>>, vector<1x32xf32>
    %cst = arith.constant dense<0.000000e+00> : vector<16xf32>
    %3 = vector.multi_reduction <add>, %0, %cst [1] : vector<16x32xf32> to vector<16xf32>
    %4 = vector.shape_cast %3 : vector<16xf32> to vector<16x1xf32>
    %cst_5 = arith.constant 3.200000e+01 : f32
    %5 = vector.broadcast %cst_5 : f32 to vector<16x1xf32>
    %6 = arith.divf %4, %5 : vector<16x1xf32>
    %7 = vector.broadcast %6 : vector<16x1xf32> to vector<16x32xf32>
    %8 = arith.subf %0, %7 : vector<16x32xf32>
    %9 = arith.mulf %8, %8 : vector<16x32xf32>
    %cst_6 = arith.constant dense<0.000000e+00> : vector<16xf32>
    %10 = vector.multi_reduction <add>, %9, %cst_6 [1] : vector<16x32xf32> to vector<16xf32>
    %11 = vector.shape_cast %10 : vector<16xf32> to vector<16x1xf32>
    %cst_7 = arith.constant 3.200000e+01 : f32
    %12 = vector.broadcast %cst_7 : f32 to vector<16x1xf32>
    %13 = arith.divf %11, %12 : vector<16x1xf32>
    %cst_8 = arith.constant 9.99999996E-13 : f32
    %14 = vector.broadcast %cst_8 : f32 to vector<16x1xf32>
    %15 = arith.addf %13, %14 : vector<16x1xf32>
    %16 = math.rsqrt %15 : vector<16x1xf32>
    %17 = vector.broadcast %16 : vector<16x1xf32> to vector<16x32xf32>
    %18 = arith.mulf %8, %17 : vector<16x32xf32>
    %19 = vector.broadcast %1 : vector<1x32xf32> to vector<16x32xf32>
    %20 = arith.mulf %18, %19 : vector<16x32xf32>
    %21 = vector.broadcast %2 : vector<1x32xf32> to vector<16x32xf32>
    %22 = arith.addf %20, %21 : vector<16x32xf32>
    %c0_9 = arith.constant 0 : index
    %c0_10 = arith.constant 0 : index
    %23 = vector.load %arg4[%c0_9, %c0_10] : memref<16x32xf32, #tpu.memory_space<vmem>>, vector<16x32xf32>
    tpu.vector_store %arg4[%c0_9, %c0_10], %22 {strides = array<i32>} : memref<16x32xf32, #tpu.memory_space<vmem>>, vector<16x32xf32>,
    return
  }
  func.func @transform_0(%arg0: i32) -> (i32, i32) {
    %c0_i32 = arith.constant 0 : i32
    %c0_i32_0 = arith.constant 0 : i32
    %c0_i32_1 = arith.constant 0 : i32
    return %c0_i32, %c0_i32_0 : i32, i32
  }
  func.func @transform_1(%arg0: i32) -> (i32, i32) {
    %c0_i32 = arith.constant 0 : i32
    %c0_i32_0 = arith.constant 0 : i32
    %c0_i32_1 = arith.constant 0 : i32
    return %c0_i32, %c0_i32_0 : i32, i32
  }
  func.func @transform_2(%arg0: i32) -> (i32, i32) {
    %c0_i32 = arith.constant 0 : i32
    %c0_i32_0 = arith.constant 0 : i32
    %c0_i32_1 = arith.constant 0 : i32
    return %c0_i32, %c0_i32_0 : i32, i32
  }
  func.func @transform_3(%arg0: i32) -> (i32, i32) {
    %c0_i32 = arith.constant 0 : i32
    %c0_i32_0 = arith.constant 0 : i32
    %c0_i32_1 = arith.constant 0 : i32
    return %c0_i32, %c0_i32_0 : i32, i32
  }
}

</mosaic_0001>

<bundles_post_ra>
// kernel: ernie_classifier_forward.7
= control target key start
LH: loop header
LB: loop body
LE: loop exit
PB: predicated region body
PF: predicated region fallthrough
CT: control target
= control target key end

     0   :  { %v286_v3 = vmov 0.0|0.0   ;;  %vm287_vm0 = vmmov 0   ;;  %v288_v6 = vmov 0.0   ;;  %s367_s0 = inlined_call_operand.vmem [shape: f32[2,32], index: 0, kind: input, shape index: {}]   ;;  %s368_s1 = inlined_call_operand.vmem [shape: f32[32,32], index: 1, kind: input, shape index: {}]   ;;  %s369_s2 = inlined_call_operand.vmem [shape: f32[1,32], index: 2, kind: input, shape index: {}]   ;;  %s370_s3 = inlined_call_operand.vmem [shape: f32[32,4], index: 3, kind: input, shape index: {}]   ;;  %s371_s4 = inlined_call_operand.vmem [shape: f32[1,4], index: 4, kind: input, shape index: {}]   ;;  %s372_s5 = inlined_call_operand.hbm [shape: f32[2,4], index: 5, kind: output, shape index: {}]  }
   0x1   :  { %v22_v0 = vld [vmem:[%s368_s1] sm:$0xff]  ;;  %v23_v1 = vld [vmem:[%s368_s1 + $0x8] sm:$0xff]  ;;  %v24_v2 = vld [vmem:[%s368_s1 + $0x10] sm:$0xff]  ;;  %244 = vmatprep.subr.bf16.mxu0 %v286_v3  ;;  %230 = vmatprep.mubr.msk.f32.mxu0 %vm287_vm0, %v288_v6 }
   0x2   :  { %v245_v4 = vpack.c.bf16 %v23_v1, %v22_v0  ;;  %v25_v5 = vld [vmem:[%s368_s1 + $0x18] sm:$0xff]  ;;  %250 = vmatprep.subr.bf16.mxu1 %v286_v3  ;;  %241 = vmatprep.mubr.msk.f32.mxu1 %vm287_vm0, %v288_v6 }
   0x3   :  { %10 = vsyncpa [#allocation3], 0  ;;  %v248_v7 = vpack.c.bf16 %v25_v5, %v24_v2  ;;  %v21_v8 = vld [vmem:[%s367_s0] sm:$0x3]  ;;  %vm33_vm1 = vcmask 261120   ;;  %v109_v10 = vld [vmem:[%s370_s3 + $0x8] sm:$0xff] }
   0x4   :  { %246 = vmatpush3.bf16.msra.mxu0 %v245_v4  ;;  %v108_v9 = vld [vmem:[%s370_s3] sm:$0xff]  ;;  %v110_v11 = vld [vmem:[%s370_s3 + $0x10] sm:$0xff]  ;;  %v111_v13 = vld [vmem:[%s370_s3 + $0x18] sm:$0xff]  ;;  %s289_s3 = smov [#allocation2]   ;;  %vm192_vm2 = vcmask 25600  }
   0x5   :  { %247 = vmatprep.subr.bf16.mxu0 %v286_v3  ;;  %v251_v12 = vpack.c.bf16 %v109_v10, %v108_v9  ;;  %v254_v14 = vpack.c.bf16 %v111_v13, %v110_v11  ;;  %v208_v15 = vld [vmem:[%s369_s2] ss:$0 sm:$0xff]  ;;  %s200_s13 = sshll.u32 %s289_s3, 4  ;;  %s201_s13 = int_to_ptr.vmem [resolvable:$true] %s200_s13 }
   0x6   :  { %v210_v20 = vld [vmem:[%s371_s4] ss:$0 sm:$0xff]  ;;  %s262_s2 = scalar_lea.vmem %s201_s13, 32  ;;  %p267_p1 = scmp.lt.s32.totalorder %s201_s13, %s201_s13 }
   0x7   :  { %252 = vmatpush3.bf16.msra.mxu1 %v251_v12  ;;  %p263_p0 = scmp.ne.s32.totalorder %s201_s13, %s262_s2  ;;  %p268_p2 = scmp.lt.s32.totalorder %s262_s2, %s262_s2 }
   0x8   :  { %249 = vmatpush3.bf16.msra.mxu0 %v248_v7  ;;  %253 = vmatprep.subr.bf16.mxu1 %v286_v3 }
   0x9   :  { %p269_p3 = por %p268_p2, %p267_p1 }
   0xb   :  { %231 = vmatmul.mubr.msk.f32.vlgmr.msra.gmra.mrb[0].mxu0 %vm33_vm1, %v21_v8  ;;  %255 = vmatpush3.bf16.msra.mxu1 %v254_v14  ;;  %p270_p4 = pnand %p269_p3, %p263_p0 }
  0xde   :  { %v103_v16 = vpop.f32.mrb[0].mxu0 }
  0xdf   :  { %v104_v17 = vadd.f32 %v208_v15, %v103_v16  ;;  %v232_v18 = vpop.f32.mrb[1].mxu0 }
  0xe1   :  { %260 = vtanh.f32 %v104_v17 }
  0xeb   :  { %v261_v19 = vpop.eup %260 }
  0xec   :  { %242 = vmatmul.mubr.msk.f32.vlgmr.msra.gmra.mrb[0].mxu1 %vm33_vm1, %v261_v19 }
 0x1bf   :  { %v188_v21 = vpop.f32.mrb[0].mxu1 }
 0x1c0   :  { %v189_v22 = vadd.f32 %v210_v20, %v188_v21  ;;  %v243_v23 = vpop.f32.mrb[1].mxu1 }
 0x1c2   :  { %193 = vst.msk [vmem:[#allocation2] sm:$0x3] %vm192_vm2, %v189_v22 }
 0x1c3   :  { %273 = shalt.err (!%p270_p4)
}
 0x1c4   :  { %s274_s16 = scalar_lea.hbm %s372_s5, 32 }
 0x1c5   :  { %p275_p5 = scmp.ne.s32.totalorder %s372_s5, %s274_s16  ;;  %p278_p6 = scmp.lt.u32.totalorder %s274_s16, %s372_s5 }
 0x1c7   :  { %p280_p7 = pnand %p278_p6, %p275_p5 }
 0x1c9   :  { %283 = shalt.err (!%p280_p7)
}
 0x1ca   :  { %203 = dma.vmem_to_hbm [thread:$0]  %s201_s13, 32, %s372_s5, [#allocation3]  }
 0x1cb   :  { %284 = dma.done.wait [#allocation3], 32  }
 0x1cc   :  { %285 = vsyncadd [#allocation3], 4294967264 }
 0x1cd   :  { %207 = vsyncpa [#allocation3], 1 }

// kernel: ernie_classifier_forward.4
= control target key start
LH: loop header
LB: loop body
LE: loop exit
PB: predicated region body
PF: predicated region fallthrough
CT: control target
= control target key end

     0   :  { %vm18_vm0 = vcmask 261120   ;;  %s118_s0 = inlined_call_operand.vmem [shape: f32[16,32], index: 0, kind: input, shape index: {}]   ;;  %s119_s1 = inlined_call_operand.vmem [shape: f32[1,32], index: 1, kind: input, shape index: {}]   ;;  %s120_s2 = inlined_call_operand.vmem [shape: f32[1,32], index: 2, kind: input, shape index: {}]   ;;  %s121_s3 = inlined_call_operand.vmem [shape: f32[16,32], index: 3, kind: output, shape index: {}]  }
   0x1   :  { %v14_v0 = vld [vmem:[%s118_s0] sm:$0xff]  ;;  %v15_v1 = vld [vmem:[%s118_s0 + $0x8] sm:$0xff] }
   0x2   :  { %v19_v2 = vsel %vm18_vm0, %v14_v0, 0.0  ;;  %v22_v3 = vsel %vm18_vm0, %v15_v1, 0.0  ;;  %v68_v21 = vld [vmem:[%s119_s1] ss:$0 sm:$0xff] }
   0x3   :  { %20 = vadd.xlane.f32.xlu0 %v19_v2  ;;  %v69_v23 = vld [vmem:[%s120_s2] ss:$0 sm:$0xff] }
   0x7   :  { %23 = vadd.xlane.f32.xlu0 %v22_v3 }
  0x90   :  { %v21_v4 = vpop.xlane.xlu0 %20 }
  0x91   :  { %v26_v5 = vmul.f32 0.03125, %v21_v4 }
  0x93   :  { %v28_v6 = vsub.f32 %v14_v0, %v26_v5 }
  0x94   :  { %v24_v7 = vpop.xlane.xlu0 %23 }
  0x95   :  { %v27_v8 = vmul.f32 0.03125, %v24_v7  ;;  %v30_v9 = vmul.f32 %v28_v6, %v28_v6 }
  0x97   :  { %v29_v10 = vsub.f32 %v15_v1, %v27_v8  ;;  %v32_v11 = vsel %vm18_vm0, %v30_v9, 0.0 }
  0x98   :  { %33 = vadd.xlane.f32.xlu1 %v32_v11 }
  0x99   :  { %v31_v12 = vmul.f32 %v29_v10, %v29_v10 }
  0x9b   :  { %v35_v13 = vsel %vm18_vm0, %v31_v12, 0.0 }
  0x9c   :  { %36 = vadd.xlane.f32.xlu1 %v35_v13 }
 0x125   :  { %v34_v14 = vpop.xlane.xlu1 %33 }
 0x126   :  { %v38_v15 = vmul.f32 0.03125, %v34_v14 }
 0x128   :  { %v40_v16 = vadd.f32 1e-12, %v38_v15 }
 0x129   :  { %v37_v17 = vpop.xlane.xlu1 %36 }
 0x12a   :  { %70 = vrsqrt.f32 %v40_v16  ;;  %v39_v18 = vmul.f32 0.03125, %v37_v17 }
 0x12c   :  { %v41_v19 = vadd.f32 1e-12, %v39_v18 }
 0x12e   :  { %72 = vrsqrt.f32 %v41_v19 }
 0x134   :  { %v71_v20 = vpop.eup %70 }
 0x135   :  { %v44_v22 = vmul.f32 %v71_v20, %v28_v6 }
 0x137   :  { %v52_v24 = vmul.f32 %v68_v21, %v44_v22 }
 0x138   :  { %v73_v25 = vpop.eup %72 }
 0x139   :  { %v60_v26 = vadd.f32 %v69_v23, %v52_v24  ;;  %v45_v27 = vmul.f32 %v73_v25, %v29_v10 }
 0x13b   :  { %62 = vst.msk [vmem:[%s121_s3] sm:$0xff] %vm18_vm0, %v60_v26  ;;  %v53_v28 = vmul.f32 %v68_v21, %v45_v27 }
 0x13d   :  { %v61_v29 = vadd.f32 %v69_v23, %v53_v28 }
 0x13f   :  { %63 = vst.msk [vmem:[%s121_s3 + $0x8] sm:$0xff] %vm18_vm0, %v61_v29 }

// kernel: ernie_classifier_forward.5
= control target key start
LH: loop header
LB: loop body
LE: loop exit
PB: predicated region body
PF: predicated region fallthrough
CT: control target
= control target key end

     0   :  { %s1588_s29 = smov 0   ;;  %s1753_s0 = inlined_call_operand.vmem [shape: f32[16,32], index: 0, kind: input, shape index: {}]   ;;  %s1754_s1 = inlined_call_operand.vmem [shape: f32[2,1,8], index: 1, kind: input, shape index: {}]   ;;  %s1755_s2 = inlined_call_operand.vmem [shape: f32[32,96], index: 2, kind: input, shape index: {}]   ;;  %s1756_s3 = inlined_call_operand.vmem [shape: f32[1,96], index: 3, kind: input, shape index: {}]   ;;  %s1757_s4 = inlined_call_operand.vmem [shape: f32[32,32], index: 4, kind: input, shape index: {}]   ;;  %s1758_s5 = inlined_call_operand.vmem [shape: f32[1,32], index: 5, kind: input, shape index: {}]   ;;  %s1759_s6 = inlined_call_operand.vmem [shape: f32[1,32], index: 6, kind: input, shape index: {}]   ;;  %s1760_s7 = inlined_call_operand.vmem [shape: f32[1,32], index: 7, kind: input, shape index: {}]   ;;  %s1761_s8 = inlined_call_operand.vmem [shape: f32[32,64], index: 8, kind: input, shape index: {}]   ;;  %s1762_s9 = inlined_call_operand.vmem [shape: f32[1,64], index: 9, kind: input, shape index: {}]   ;;  %s1763_s10 = inlined_call_operand.vmem [shape: f32[64,32], index: 10, kind: input, shape index: {}]   ;;  %s1764_s11 = inlined_call_operand.vmem [shape: f32[1,32], index: 11, kind: input, shape index: {}]   ;;  %s1765_s12 = inlined_call_operand.vmem [shape: f32[1,32], index: 12, kind: input, shape index: {}]   ;;  %s1766_s13 = inlined_call_operand.vmem [shape: f32[1,32], index: 13, kind: input, shape index: {}]   ;;  %s1767_s14 = inlined_call_operand.vmem [shape: f32[16,32], index: 14, kind: output, shape index: {}]  }
   0x1 LB: > { %s1303_s30 = sadd.s32 4294967295, %s1502_s29   ;;  %p1307_p0 = scmp.ge.s32.totalorder %s1502_s29, 1  ;;  %s1502_s29 = sphi %s1588_s29, %s24_s29  }
   0x2   : > { %p419_p1 = scmp.lt.s32.totalorder %s1502_s29, 3 }
   0x4   : > { %p420_p2 = pnand %p1307_p0, %p419_p1 }
   0x5   : > { %v478_v0 = vld [vmem:[%s1755_s2] sm:$0xff] (!%p420_p2)  ;;  %v479_v1 = vld [vmem:[%s1755_s2 + $0x8] sm:$0xff] (!%p420_p2)  ;;  %v480_v2 = vld [vmem:[%s1755_s2 + $0x10] sm:$0xff] (!%p420_p2)  ;;  %v1504_v3 = vmov (!%p420_p2), 0.0|0.0   ;;  %vm1505_vm0 = vmmov (!%p420_p2), 0   ;;  %v1506_v6 = vmov (!%p420_p2), 0.0  }
   0x6   : > { %423 = sbr.rel (%p420_p2) target bundleno = 2516 (0x9d4), region = 76  ;;  %1435 = vmatprep.subr.bf16.mxu1 (!%p420_p2), %v1504_v3  ;;  %v1436_v4 = vpack.c.bf16 (!%p420_p2), %v479_v1, %v478_v0  ;;  %v481_v5 = vld [vmem:[%s1755_s2 + $0x18] sm:$0xff] (!%p420_p2)  ;;  %1371 = vmatprep.mubr.msk.f32.mxu1 (!%p420_p2), %vm1505_vm0, %v1506_v6  ;;  %p466_p3 = scmp.lt.s32.totalorder (!%p420_p2), %s1303_s30, 1  ;;  %vm489_vm1 = vcmask (!%p420_p2), 261120   ;;  %v1310_v9 = vld [vmem:[%s1756_s3] ss:$0 sm:$0xff] (!%p420_p2) }
   0x7   : > { %1384 = vmatprep.subr.mxu0 (!%p420_p2), %v1506_v6  ;;  %1386 = vmatprep.mubr.msk.f32.mxu0 (!%p420_p2), %vm1505_vm0, %v1506_v6  ;;  %v1439_v7 = vpack.c.bf16 (!%p420_p2), %v481_v5, %v480_v2  ;;  %s1507_s15 = smov (!%p420_p2), 112   ;;  %s1508_s16 = smov (!%p420_p2), 96   ;;  %vm567_vm2 = vcmask (!%p420_p2), 130048   ;;  %vm650_vm3 = vcmask (!%p420_p2), 64512   ;;  %v913_v45 = vld [vmem:[%s1757_s4] sm:$0xff] (!%p420_p2)  ;;  %v914_v46 = vld [vmem:[%s1757_s4 + $0x8] sm:$0xff] (!%p420_p2) }
   0x8   : > { %1437 = vmatpush3.bf16.msra.mxu1 (!%p420_p2), %v1436_v4  ;;  %s1509_s17 = smov (!%p420_p2), 80   ;;  %s1510_s21 = smov (!%p420_p2), 48   ;;  %v1442_v47 = vpack.c.bf16 (!%p420_p2), %v914_v46, %v913_v45  ;;  %v915_v48 = vld [vmem:[%s1757_s4 + $0x10] sm:$0xff] (!%p420_p2)  ;;  %v916_v49 = vld [vmem:[%s1757_s4 + $0x18] sm:$0xff] (!%p420_p2)  ;;  %vm910_vm4 = vcmask (!%p420_p2), 261248   ;;  %v1028_v5 = vld [vmem:[%s1761_s8] sm:$0xff] (!%p420_p2) }
   0x9   : > { %1438 = vmatprep.subr.bf16.mxu1 (!%p420_p2), %v1504_v3  ;;  %s1511_s22 = smov (!%p420_p2), 64   ;;  %v1445_v50 = vpack.c.bf16 (!%p420_p2), %v916_v49, %v915_v48  ;;  %s1512_s18 = smov (!%p420_p2), 16   ;;  %v1319_v57 = vld [vmem:[%s1758_s5] ss:$0 sm:$0xff] (!%p420_p2)  ;;  %vm1136_vm5 = vcmask (!%p420_p2), 523264  }
   0xc   : > { %1440 = vmatpush3.bf16.msra.mxu1 (!%p420_p2), %v1439_v7 }
   0xd   : > { %s1769_s30 = smov (!%p466_p3, %s1303_s30), 1  ;;  %1374 = vmatprep.subr.mxu1 %v1506_v6 }
   0xe   : > { %s1308_s23 = sshll.u32 %s1769_s30, 3  ;;  %s472_s20 = scalar_lea.vmem %s1754_s1, %s1769_s30 }
   0xf   : > { %s469_s26 = scalar_lea.vmem %s1753_s0, %s1308_s23  ;;  %v1314_v17 = vld [vmem:[%s472_s20] ss:$0 sm:$0xff]  ;;  %s476_s20 = scalar_lea.vmem %s1767_s14, %s1308_s23 }
  0x10   : > { %v1623_v8 = vld [vmem:[%s469_s26] sm:$0xff] }
  0x11   : > { %1372 = vmatmul.mubr.msk.f32.vlgmr.msra.gmra.mrb[0].mxu1 %vm489_vm1, %v1623_v8 }
  0x12   : > { %1376 = vmatprep.mubr.msk.f32.mxu1 %vm1505_vm0, %v1506_v6 }
  0xe4   : > { %v559_v10 = vpop.f32.mrb[0].mxu1 }
  0xe5   : > { %v560_v11 = vadd.f32 %v1310_v9, %v559_v10  ;;  %v1373_v12 = vpop.f32.mrb[1].mxu1  ;;  %v1031_v9 = vld [vmem:[%s1761_s8 + $0x18] sm:$0xff] }
  0xe7   : > { %739 = vrot.lane.b32.xlu1 %v560_v11, %s1507_s15  ;;  %565 = vrot.lane.b32.xlu0 %v560_v11, %s1508_s16 }
  0xeb   : > { %741 = vrot.lane.b32.xlu0 %v560_v11, %s1509_s17 }
 0x159   : > { %v566_v13 = vpop.permute.xlu0 %565  ;;  %v740_v15 = vpop.permute.xlu1 %739 }
 0x15a   : > { %1375 = vmatpush3.xpose.msk.msra.mxu1 %vm567_vm2, %v566_v13 }
 0x15b   : > { %1379 = vmatprep.subr.mxu1 %v1506_v6 }
 0x15d   : > { %1377 = vmatmul.mubr.msk.f32.vlgmr.msra.gmra.mrb[2].mxu1 %vm567_vm2, %v560_v11  ;;  %v742_v14 = vpop.permute.xlu0 %741 }
 0x15e   : > { %1385 = vmatpush3.xpose.msk.msra.mxu0 %vm567_vm2, %v742_v14  ;;  %1381 = vmatprep.mubr.msk.f32.mxu1 %vm1505_vm0, %v1506_v6 }
 0x15f   : > { %1441 = vmatprep.subr.bf16.mxu0 %v1504_v3 }
 0x161   : > { %1387 = vmatmul.mubr.msk.f32.vlgmr.msra.gmra.mrb[0].mxu0 %vm567_vm2, %v740_v15  ;;  %v1321_v15 = vld [vmem:[%s1759_s6] ss:$0 sm:$0xff] }
 0x162   : > { %1402 = vmatprep.mubr.msk.f32.mxu0 %vm1505_vm0, %v1506_v6  ;;  %1443 = vmatpush3.bf16.msra.mxu0 %v1442_v47 }
 0x163   : > { %1444 = vmatprep.subr.bf16.mxu0 %v1504_v3 }
 0x166   : > { %1446 = vmatpush3.bf16.msra.mxu0 %v1445_v50 }
 0x167   : > { %1453 = vmatprep.subr.bf16.mxu0 %v1504_v3 }
 0x230   : > { %v638_v16 = vpop.f32.mrb[2].mxu1 }
 0x231   : > { %v642_v18 = vmul.f32 0.25, %v638_v16  ;;  %v1378_v19 = vpop.f32.mrb[3].mxu1 }
 0x233   : > { %v649_v20 = vadd.f32 %v1314_v17, %v642_v18 }
 0x234   : > { %v813_v21 = vpop.f32.mrb[0].mxu0 }
 0x235   : > { %v817_v22 = vmul.f32 0.25, %v813_v21  ;;  %v1388_v23 = vpop.f32.mrb[1].mxu0  ;;  %v651_v24 = vsel %vm650_vm3, %v649_v20, -inf  ;;  %v1122_v21 = vld [vmem:[%s1763_s10 + $0x8] sm:$0xff] }
 0x236   : > { %652 = vmax.xlane.f32.xlu1 %v651_v24  ;;  %v1123_v23 = vld [vmem:[%s1763_s10 + $0x10] sm:$0xff]  ;;  %v1124_v24 = vld [vmem:[%s1763_s10 + $0x18] sm:$0xff] }
 0x237   : > { %v818_v25 = vadd.f32 %v1314_v17, %v817_v22  ;;  %v1322_v17 = vld [vmem:[%s1760_s7] ss:$0 sm:$0xff] }
 0x239   : > { %v819_v26 = vsel %vm650_vm3, %v818_v25, -inf }
 0x23a   : > { %820 = vmax.xlane.f32.xlu0 %v819_v26  ;;  %v1125_v26 = vld [vmem:[%s1763_s10 + $0x20] sm:$0xff] }
 0x2c3   : > { %v653_v27 = vpop.xlane.xlu1 %652 }
 0x2c4   : > { %v654_v28 = vsub.f32 %v649_v20, %v653_v27  ;;  %v1121_v20 = vld [vmem:[%s1763_s10] sm:$0xff]  ;;  %v1126_v27 = vld [vmem:[%s1763_s10 + $0x28] sm:$0xff] }
 0x2c5   : > { %v1454_v22 = vpack.c.bf16 %v1122_v21, %v1121_v20 }
 0x2c6   : > { %v655_v29 = vmul.f32 1.442695, %v654_v28  ;;  %v1460_v28 = vpack.c.bf16 %v1126_v27, %v1125_v26 }
 0x2c7   : > { %v821_v30 = vpop.xlane.xlu0 %820 }
 0x2c8   : > { %1482 = vpow2.f32 %v655_v29  ;;  %v822_v31 = vsub.f32 %v818_v25, %v821_v30  ;;  %v1457_v25 = vpack.c.bf16 %v1124_v24, %v1123_v23  ;;  %v1127_v29 = vld [vmem:[%s1763_s10 + $0x30] sm:$0xff]  ;;  %v1128_v30 = vld [vmem:[%s1763_s10 + $0x38] sm:$0xff] }
 0x2ca   : > { %v823_v32 = vmul.f32 1.442695, %v822_v31  ;;  %v1463_v31 = vpack.c.bf16 %v1128_v30, %v1127_v29 }
 0x2cc   : > { %1484 = vpow2.f32 %v823_v32  ;;  %v1323_v32 = vld [vmem:[%s1762_s9] ss:$0 sm:$0xff] }
 0x2d2   : > { %v1483_v33 = vpop.eup %1482 }
 0x2d3   : > { %v657_v34 = vsel %vm650_vm3, %v1483_v33, 0.0 }
 0x2d4   : > { %658 = vadd.xlane.f32.xlu0 %v657_v34 }
 0x2d6   : > { %v1485_v35 = vpop.eup %1484 }
 0x2d7   : > { %v825_v36 = vsel %vm650_vm3, %v1485_v35, 0.0 }
 0x2d8   : > { %826 = vadd.xlane.f32.xlu1 %v825_v36 }
 0x2e9   : > { %830 = vrot.lane.b32.xlu1 %v560_v11, %s1510_s21 }
 0x2ea   : > { %662 = vrot.lane.b32.xlu0 %v560_v11, %s1511_s22 }
 0x361   : > { %v659_v37 = vpop.xlane.xlu0 %658 }
 0x362   : > { %1486 = vrcp.f32 %v659_v37 }
 0x365   : > { %v663_v38 = vpop.permute.xlu0 %662  ;;  %v827_v39 = vpop.xlane.xlu1 %826 }
 0x366   : > { %1488 = vrcp.f32 %v827_v39  ;;  %1380 = vmatpush3.msra.mxu1 %v663_v38 }
 0x367   : > { %1389 = vmatprep.subr.mxu1 %v1506_v6 }
 0x369   : > { %v831_v42 = vpop.permute.xlu1 %830 }
 0x36c   : > { %v1487_v40 = vpop.eup %1486 }
 0x36d   : > { %v661_v41 = vmul.f32 %v1487_v40, %v1483_v33 }
 0x36f   : > { %1382 = vmatmul.mubr.msk.f32.vlgmr.msra.gmra.mrb[4].mxu1 %vm650_vm3, %v661_v41 }
 0x370   : > { %v1489_v43 = vpop.eup %1488  ;;  %1390 = vmatpush3.msra.mxu1 %v831_v42  ;;  %1391 = vmatprep.mubr.msk.f32.mxu1 %vm1505_vm0, %v1506_v6 }
 0x371   : > { %v829_v44 = vmul.f32 %v1489_v43, %v1485_v35  ;;  %1447 = vmatprep.subr.bf16.mxu1 %v1504_v3 }
 0x373   : > { %1392 = vmatmul.mubr.msk.f32.vlgmr.msra.gmra.mrb[6].mxu1 %vm650_vm3, %v829_v44 }
 0x374   : > { %1413 = vmatprep.mubr.msk.f32.mxu1 %vm1505_vm0, %v1506_v6 }
 0x442   : > { %v734_v51 = vpop.f32.mrb[4].mxu1 }
 0x443   : > { %738 = vst.msk [vmem:[#allocation2] sm:$0xff] %vm567_vm2, %v734_v51  ;;  %v1383_v52 = vpop.f32.mrb[5].mxu1 }
 0x446   : > { %v902_v53 = vpop.f32.mrb[6].mxu1 }
 0x447   : > { %907 = vrot.lane.b32.xlu1 %v902_v53, %s1512_s18  ;;  %v1393_v54 = vpop.f32.mrb[7].mxu1 }
 0x4b9   : > { %v908_v55 = vpop.permute.xlu1 %907 }
 0x4ba   : > { %911 = vst.msk [vmem:[#allocation2] sm:$0xff] %vm910_vm4, %v908_v55 }
 0x4c1   : > { %v912_v56 = vld [vmem:[#allocation2] sm:$0xff] }
 0x4c2   : > { %1403 = vmatmul.mubr.msk.f32.vlgmr.msra.gmra.mrb[2].mxu0 %vm489_vm1, %v912_v56 }
 0x4c3   : > { %1432 = vmatprep.mubr.msk.f32.mxu0 %vm1505_vm0, %v1506_v6  ;;  %v1029_v6 = vld [vmem:[%s1761_s8 + $0x8] sm:$0xff]  ;;  %1455 = vmatpush3.bf16.msra.mxu0 %v1454_v22 }
 0x4c4   : > { %v1448_v7 = vpack.c.bf16 %v1029_v6, %v1028_v5  ;;  %1456 = vmatprep.subr.bf16.mxu0 %v1504_v3 }
 0x4c6   : > { %1449 = vmatpush3.bf16.msra.mxu1 %v1448_v7 }
 0x4c7   : > { %1450 = vmatprep.subr.bf16.mxu1 %v1504_v3  ;;  %1458 = vmatpush3.bf16.msra.mxu0 %v1457_v25 }
 0x4c8   : > { %1459 = vmatprep.subr.bf16.mxu0 %v1504_v3 }
 0x4cb   : > { %1461 = vmatpush3.bf16.msra.mxu0 %v1460_v28 }
 0x4cc   : > { %1462 = vmatprep.subr.bf16.mxu0 %v1504_v3  ;;  %v1325_v3 = vld [vmem:[%s1764_s11] ss:$0 sm:$0xff] }
 0x4cf   : > { %1464 = vmatpush3.bf16.msra.mxu0 %v1463_v31 }
 0x595   : > { %v993_v58 = vpop.f32.mrb[2].mxu0 }
 0x596   : > { %v994_v59 = vadd.f32 %v1319_v57, %v993_v58  ;;  %v1404_v60 = vpop.f32.mrb[3].mxu0 }
 0x598   : > { %v997_v61 = vadd.f32 %v994_v59, %v1623_v8  ;;  %v1030_v8 = vld [vmem:[%s1761_s8 + $0x10] sm:$0xff]  ;;  %v1327_v59 = vld [vmem:[%s1765_s12] ss:$0 sm:$0xff] }
 0x599   : > { %v1451_v10 = vpack.c.bf16 %v1031_v9, %v1030_v8 }
 0x59a   : > { %v1000_v62 = vsel %vm489_vm1, %v997_v61, 0.0 }
 0x59b   : > { %1001 = vadd.xlane.f32.xlu0 %v1000_v62  ;;  %1452 = vmatpush3.bf16.msra.mxu1 %v1451_v10 }
 0x628   : > { %v1002_v63 = vpop.xlane.xlu0 %1001 }
 0x629   : > { %v1004_v0 = vmul.f32 0.03125, %v1002_v63 }
 0x62b   : > { %v1005_v1 = vsub.f32 %v997_v61, %v1004_v0  ;;  %v1328_v61 = vld [vmem:[%s1766_s13] ss:$0 sm:$0xff] }
 0x62d   : > { %v1006_v2 = vmul.f32 %v1005_v1, %v1005_v1 }
 0x62f   : > { %v1007_v4 = vsel %vm489_vm1, %v1006_v2, 0.0 }
 0x630   : > { %1008 = vadd.xlane.f32.xlu1 %v1007_v4 }
 0x6bd   : > { %v1009_v11 = vpop.xlane.xlu1 %1008 }
 0x6be   : > { %v1010_v12 = vmul.f32 0.03125, %v1009_v11 }
 0x6c0   : > { %v1011_v13 = vadd.f32 1e-12, %v1010_v12 }
 0x6c2   : > { %1490 = vrsqrt.f32 %v1011_v13 }
 0x6cc   : > { %v1491_v14 = vpop.eup %1490 }
 0x6cd   : > { %v1013_v16 = vmul.f32 %v1491_v14, %v1005_v1 }
 0x6cf   : > { %v1020_v18 = vmul.f32 %v1321_v15, %v1013_v16 }
 0x6d1   : > { %v1027_v19 = vadd.f32 %v1322_v17, %v1020_v18 }
 0x6d3   : > { %1414 = vmatmul.mubr.msk.f32.vlgmr.msra.gmra.mrb[8].mxu1 %vm489_vm1, %v1027_v19 }
 0x7a6   : > { %v1108_v33 = vpop.f32.mrb[8].mxu1 }
 0x7a7   : > { %v1109_v34 = vadd.f32 %v1323_v32, %v1108_v33  ;;  %v1415_v35 = vpop.f32.mrb[9].mxu1 }
 0x7a9   : > { %v1113_v36 = vmul.f32 0.044715, %v1109_v34  ;;  %v1112_v42 = vmul.f32 0.5, %v1109_v34 }
 0x7ab   : > { %v1114_v37 = vmul.f32 %v1113_v36, %v1109_v34 }
 0x7ad   : > { %v1115_v38 = vmul.f32 %v1114_v37, %v1109_v34 }
 0x7af   : > { %v1116_v39 = vadd.f32 %v1115_v38, %v1109_v34 }
 0x7b1   : > { %v1117_v40 = vmul.f32 0.7978846, %v1116_v39 }
 0x7b3   : > { %1492 = vtanh.f32 %v1117_v40 }
 0x7bd   : > { %v1493_v41 = vpop.eup %1492 }
 0x7be   : > { %v1119_v43 = vadd.f32 1.0, %v1493_v41 }
 0x7c0   : > { %v1120_v44 = vmul.f32 %v1119_v43, %v1112_v42 }
 0x7c2   : > { %1433 = vmatmul.mubr.msk.f32.vlgmr.msra.gmra.mrb[4].mxu0 %vm1136_vm5, %v1120_v44 }
 0x895   : > { %v1206_v45 = vpop.f32.mrb[4].mxu0 }
 0x896   : > { %v1207_v46 = vadd.f32 %v1325_v3, %v1206_v45  ;;  %v1434_v47 = vpop.f32.mrb[5].mxu0 }
 0x898   : > { %v1210_v48 = vadd.f32 %v1207_v46, %v1027_v19 }
 0x89a   : > { %v1213_v49 = vsel %vm489_vm1, %v1210_v48, 0.0 }
 0x89b   : > { %1214 = vadd.xlane.f32.xlu0 %v1213_v49 }
 0x928   : > { %v1215_v50 = vpop.xlane.xlu0 %1214 }
 0x929   : > { %v1216_v51 = vmul.f32 0.03125, %v1215_v50 }
 0x92b   : > { %v1217_v52 = vsub.f32 %v1210_v48, %v1216_v51 }
 0x92d   : > { %v1218_v53 = vmul.f32 %v1217_v52, %v1217_v52 }
 0x92f   : > { %v1219_v54 = vsel %vm489_vm1, %v1218_v53, 0.0 }
 0x930   : > { %1220 = vadd.xlane.f32.xlu0 %v1219_v54 }
 0x9bd   : > { %v1221_v55 = vpop.xlane.xlu0 %1220 }
 0x9be   : > { %v1222_v56 = vmul.f32 0.03125, %v1221_v55 }
 0x9c0   : > { %v1223_v57 = vadd.f32 1e-12, %v1222_v56 }
 0x9c2   : > { %1494 = vrsqrt.f32 %v1223_v57 }
 0x9cc   : > { %v1495_v58 = vpop.eup %1494 }
 0x9cd   : > { %v1225_v60 = vmul.f32 %v1495_v58, %v1217_v52 }
 0x9cf   : > { %v1232_v62 = vmul.f32 %v1327_v59, %v1225_v60 }
 0x9d1   : > { %v1239_v63 = vadd.f32 %v1328_v61, %v1232_v62 }
 0x9d3   : > { %1240 = vst.msk [vmem:[%s476_s20] sm:$0xff] %vm489_vm1, %v1239_v63 }
 0x9d4 PF: > { %s24_s29 = sadd.s32 1, %s1502_s29  }
 0x9d5   : > { %p21_p4 = scmp.ge.s32.totalorder %s24_s29, 4  }
 0x9d7   :  { %23 = sbr.rel (!%p21_p4) target bundleno = 1 (0x1), region = 109 }

</bundles_post_ra>
